<compile_context>
chip_gen: v7x
topology: tpu7x:2x2x1
jax: 0.10.0
libtpu: 0.0.40
codegen_flags: <defaults>
</compile_context>

<pallas_src>
import jax
import jax.numpy as jnp
from jax.experimental import pallas as pl
from jax.experimental.pallas import tpu as pltpu


def conv_bn_silu(x_nchw, weight_oihw, gamma, beta, running_mean, running_var,
                 *, eps=1e-5, k=3, pad=None, stride=1, groups=1, dilation=1,
                 compute_dtype=jnp.bfloat16, images_per_block=None):
    """ultralytics Conv forward (Conv2d[bias=False] -> BatchNorm2d(eval) -> SiLU). NCHW in/out."""
    if stride != 1 or groups != 1 or dilation != 1:
        # TODO(synk): stride != 1, groups != 1, dilation != 1 of the generic Conv are not implemented.
        raise NotImplementedError("only stride=1, groups=1, dilation=1 supported")
    N, C1, H, W = x_nchw.shape
    C2, _, KH, KW = weight_oihw.shape
    assert KH == k and KW == k, "square kernel expected"
    K = k
    if pad is None:
        pad = K // 2                       # autopad(k, None, 1)
    if 2 * pad != K - 1:
        # TODO(synk): only 'same'-size convs (2*pad == k-1, odd k) are supported.
        raise NotImplementedError("only same-size padding (2*pad == k-1) supported")

    HW = H * W
    guard = pad * W + pad                  # flattened top zero rows + per-end lane guard
    L = HW + 2 * guard                     # flat length the kernel sees per (image, channel)

    # ---- wrapper-side glue: ONE cheap zero-pad, no im2col materialized in HBM ---------------
    x_flat = jnp.pad(x_nchw.reshape(N, C1, HW), ((0, 0), (0, 0), (guard, guard)))
    x_flat = x_flat.astype(compute_dtype)

    # Fold BatchNorm (eval mode, running stats) scale into the conv weight in f32.
    scale = gamma.astype(jnp.float32) / jnp.sqrt(running_var.astype(jnp.float32) + eps)
    bias2d = (beta.astype(jnp.float32) - running_mean.astype(jnp.float32) * scale).reshape(C2, 1)
    w_fold = weight_oihw.astype(jnp.float32) * scale.reshape(C2, 1, 1, 1)
    # (C2, C1, K, K) -> (C2, K*K*C1), (kh, kw)-major / channel-minor (matches window order below).
    w2 = jnp.transpose(w_fold, (0, 2, 3, 1)).reshape(C2, K * K * C1).astype(compute_dtype)

    # ---- images per grid step: amortize per-step overhead, cap block size for v7x VMEM ------
    in_bytes = C1 * L * jnp.dtype(compute_dtype).itemsize
    out_bytes = C2 * HW * jnp.dtype(x_nchw.dtype).itemsize
    budget = 12 << 20                      # per-step budget: double-buffered blocks << 64 MiB/TC
    if images_per_block is None:
        nb = 1
        for cand in range(N, 0, -1):
            if N % cand == 0 and cand * (2 * in_bytes + 2 * out_bytes) <= budget:
                nb = cand
                break
    else:
        nb = int(images_per_block)
        assert N % nb == 0, "images_per_block must divide N"
    # TODO(synk): for large H*W (real BiFPN feature maps) add a grid axis tiling HW in
    #             multiples of 128 lanes; unnecessary at these sizes.

    def kernel(x_ref, w_ref, b_ref, o_ref):
        # x_ref: (nb, C1, L)       flattened, H-padded (+/- lane guard) input
        # w_ref: (C2, K*K*C1)      BN-scale-folded conv weights
        # b_ref: (C2, 1)           folded BN bias
        # o_ref: (nb, C2, HW)      NCHW-flat output (lane-dense, unmasked stores)
        col = jax.lax.broadcasted_iota(jnp.int32, (1, HW), 1) % W   # output column per lane
        bias = b_ref[...]
        w2v = w_ref[...]
        for img in range(nb):
            x = x_ref[img]                                          # (C1, L)
            windows = []
            for kh in range(K):
                for kw in range(K):
                    s = kh * W + kw
                    win = x[:, s:s + HW]                            # shifted window (C1, HW)
                    dw = kw - pad
                    if dw != 0:                                     # mask width-boundary wrap
                        valid = ((col + dw >= 0) & (col + dw < W)).astype(win.dtype)
                        win = win * valid
                    windows.append(win)
            patches = jnp.concatenate(windows, axis=0)              # (K*K*C1, HW), in VMEM only
            y = jax.lax.dot_general(
                w2v, patches,
                dimension_numbers=(((1,), (0,)), ((), ())),
                preferred_element_type=jnp.float32)                 # (C2, HW), f32 MXU accumulate
            y = y + bias                                            # folded BatchNorm bias
            y = y * jax.nn.sigmoid(y)                               # SiLU
            o_ref[img] = y.astype(o_ref.dtype)

    out_flat = pl.pallas_call(
        kernel,
        out_shape=jax.ShapeDtypeStruct((N, C2, HW), x_nchw.dtype),
        grid_spec=pltpu.PrefetchScalarGridSpec(
            num_scalar_prefetch=0,
            grid=(N // nb,),
            in_specs=[
                pl.BlockSpec((nb, C1, L), lambda n: (n, 0, 0)),
                pl.BlockSpec((C2, K * K * C1), lambda n: (0, 0)),
                pl.BlockSpec((C2, 1), lambda n: (0, 0)),
            ],
            out_specs=pl.BlockSpec((nb, C2, HW), lambda n: (n, 0, 0)),
        ),
        compiler_params=pltpu.CompilerParams(
            dimension_semantics=("parallel",),       # lets v7x split grid steps across its 2 TCs
            vmem_limit_bytes=32 << 20),
    )(x_flat, w2, bias2d)

    return out_flat.reshape(N, C2, H, W)             # already contiguous NCHW; reshape is free


def _reference(x_nchw, weight_oihw, gamma, beta, running_mean, running_var, *, eps=1e-5, pad=1):
    y = jax.lax.conv_general_dilated(
        x_nchw, weight_oihw, window_strides=(1, 1),
        padding=((pad, pad), (pad, pad)),
        dimension_numbers=("NCHW", "OIHW", "NCHW"))
    scale = (gamma / jnp.sqrt(running_var + eps)).reshape(1, -1, 1, 1)
    bias = (beta - running_mean * gamma / jnp.sqrt(running_var + eps)).reshape(1, -1, 1, 1)
    y = y * scale + bias
    return y * jax.nn.sigmoid(y)


if __name__ == "__main__":
    key = jax.random.PRNGKey(0)
    k_x, k_w, k_g, k_b, k_m, k_v = jax.random.split(key, 6)

    N, C1, H, W = 2, 4, 16, 16
    C2, K = 8, 3

    x = jax.random.normal(k_x, (N, C1, H, W), jnp.float32)
    weight = jax.random.normal(k_w, (C2, C1, K, K), jnp.float32) * 0.1   # Conv2d weight (OIHW), bias=False
    gamma = 1.0 + 0.1 * jax.random.normal(k_g, (C2,), jnp.float32)       # BN weight
    beta = 0.1 * jax.random.normal(k_b, (C2,), jnp.float32)              # BN bias
    running_mean = 0.1 * jax.random.normal(k_m, (C2,), jnp.float32)
    running_var = 1.0 + 0.5 * jax.nn.sigmoid(jax.random.normal(k_v, (C2,), jnp.float32))

    ref = _reference(x, weight, gamma, beta, running_mean, running_var)

    # f32 operand path: strict check against the lax.conv reference.
    out_f32 = conv_bn_silu(x, weight, gamma, beta, running_mean, running_var, k=K,
                           compute_dtype=jnp.float32)
    out_f32 = jax.block_until_ready(out_f32)
    assert out_f32.shape == (N, C2, H, W)
    assert jnp.allclose(out_f32, ref, atol=1e-4, rtol=1e-4), "f32 mismatch vs reference"

    # default bf16 operand path (f32 accumulation/epilogue): relaxed tolerance, expected precision.
    out_bf16 = conv_bn_silu(x, weight, gamma, beta, running_mean, running_var, k=K)
    out_bf16 = jax.block_until_ready(out_bf16)
    assert out_bf16.shape == (N, C2, H, W)
    assert jnp.allclose(out_bf16, ref, atol=5e-2, rtol=5e-2), "bf16 mismatch vs reference"

    print("KERNEL_OK")
</pallas_src>

<mosaic_0001>
module attributes {stable_mosaic.version = 11 : i64} {
  func.func @kernel(%arg0: i32, %arg1: memref<2x4x290xf32, #tpu.memory_space<vmem>>, %arg2: memref<8x36xf32, #tpu.memory_space<vmem>>, %arg3: memref<8x1xf32, #tpu.memory_space<vmem>>, %arg4: memref<2x8x256xf32, #tpu.memory_space<vmem>>) attributes {dimension_semantics = [#tpu.dimension_semantics<parallel>], iteration_bounds = array<i64: 1>, scalar_prefetch = 0 : i64, scratch_operands = 0 : i64, tpu.core_type = #tpu.core_type<tc>, window_params = [{transform_indices = @transform_0, window_bounds = array<i64: 2, 4, 290>}, {pipeline_mode = #tpu.pipeline_mode<synchronous>, transform_indices = @transform_1, window_bounds = array<i64: 8, 36>}, {pipeline_mode = #tpu.pipeline_mode<synchronous>, transform_indices = @transform_2, window_bounds = array<i64: 8, 1>}, {transform_indices = @transform_3, window_bounds = array<i64: 2, 8, 256>}]} {
    %0 = tpu.iota {dimensions = array<i32: 1>} : vector<1x256xi32>
    %c16_i32 = arith.constant 16 : i32
    %c0_i32 = arith.constant 0 : i32
    %1 = arith.cmpi eq, %c16_i32, %c0_i32 : i32
    %c1_i32 = arith.constant 1 : i32
    %2 = arith.select %1, %c1_i32, %c16_i32 : i32
    %3 = vector.broadcast %2 : i32 to vector<1x256xi32>
    %4 = arith.remsi %0, %3 : vector<1x256xi32>
    %c0_i32_0 = arith.constant 0 : i32
    %5 = vector.broadcast %c0_i32_0 : i32 to vector<1x256xi32>
    %6 = arith.cmpi ne, %4, %5 : vector<1x256xi32>
    %c0_i32_1 = arith.constant 0 : i32
    %7 = vector.broadcast %c0_i32_1 : i32 to vector<1x256xi32>
    %8 = arith.cmpi slt, %4, %7 : vector<1x256xi32>
    %c0_i32_2 = arith.constant 0 : i32
    %9 = arith.cmpi slt, %2, %c0_i32_2 : i32
    %10 = vector.broadcast %9 : i1 to vector<1x256xi1>
    %11 = vector.broadcast %10 : vector<1x256xi1> to vector<1x256xi1>
    %12 = arith.xori %8, %11 : vector<1x256xi1>
    %13 = arith.andi %12, %6 : vector<1x256xi1>
    %14 = vector.broadcast %2 : i32 to vector<1x256xi32>
    %15 = arith.addi %4, %14 : vector<1x256xi32>
    %16 = arith.select %13, %15, %4 : vector<1x256xi1>, vector<1x256xi32>
    %c0 = arith.constant 0 : index
    %c0_3 = arith.constant 0 : index
    %17 = vector.load %arg3[%c0, %c0_3] : memref<8x1xf32, #tpu.memory_space<vmem>>, vector<8x1xf32>
    %c0_4 = arith.constant 0 : index
    %c0_5 = arith.constant 0 : index
    %18 = vector.load %arg2[%c0_4, %c0_5] : memref<8x36xf32, #tpu.memory_space<vmem>>, vector<8x36xf32>
    %c0_6 = arith.constant 0 : index
    %c0_7 = arith.constant 0 : index
    %c0_8 = arith.constant 0 : index
    %19 = vector.load %arg1[%c0_6, %c0_7, %c0_8] : memref<2x4x290xf32, #tpu.memory_space<vmem>>, vector<1x4x290xf32>
    %20 = vector.shape_cast %19 : vector<1x4x290xf32> to vector<4x290xf32>
    %21 = vector.extract_strided_slice %20 {offsets = [0, 0], sizes = [4, 256], strides = [1, 1]} : vector<4x290xf32> to vector<4x256xf32>
    %c-1_i32 = arith.constant -1 : i32
    %22 = vector.broadcast %c-1_i32 : i32 to vector<1x256xi32>
    %23 = arith.addi %16, %22 : vector<1x256xi32>
    %c0_i32_9 = arith.constant 0 : i32
    %24 = vector.broadcast %c0_i32_9 : i32 to vector<1x256xi32>
    %25 = arith.cmpi sge, %23, %24 : vector<1x256xi32>
    %c-1_i32_10 = arith.constant -1 : i32
    %26 = vector.broadcast %c-1_i32_10 : i32 to vector<1x256xi32>
    %27 = arith.addi %16, %26 : vector<1x256xi32>
    %c16_i32_11 = arith.constant 16 : i32
    %28 = vector.broadcast %c16_i32_11 : i32 to vector<1x256xi32>
    %29 = arith.cmpi slt, %27, %28 : vector<1x256xi32>
    %30 = arith.andi %25, %29 : vector<1x256xi1>
    %31 = arith.extui %30 : vector<1x256xi1> to vector<1x256xi32>
    %32 = arith.sitofp %31 : vector<1x256xi32> to vector<1x256xf32>
    %33 = vector.broadcast %32 : vector<1x256xf32> to vector<4x256xf32>
    %34 = arith.mulf %21, %33 : vector<4x256xf32>
    %35 = vector.extract_strided_slice %20 {offsets = [0, 1], sizes = [4, 256], strides = [1, 1]} : vector<4x290xf32> to vector<4x256xf32>
    %36 = vector.extract_strided_slice %20 {offsets = [0, 2], sizes = [4, 256], strides = [1, 1]} : vector<4x290xf32> to vector<4x256xf32>
    %c1_i32_12 = arith.constant 1 : i32
    %37 = vector.broadcast %c1_i32_12 : i32 to vector<1x256xi32>
    %38 = arith.addi %16, %37 : vector<1x256xi32>
    %c0_i32_13 = arith.constant 0 : i32
    %39 = vector.broadcast %c0_i32_13 : i32 to vector<1x256xi32>
    %40 = arith.cmpi sge, %38, %39 : vector<1x256xi32>
    %c1_i32_14 = arith.constant 1 : i32
    %41 = vector.broadcast %c1_i32_14 : i32 to vector<1x256xi32>
    %42 = arith.addi %16, %41 : vector<1x256xi32>
    %c16_i32_15 = arith.constant 16 : i32
    %43 = vector.broadcast %c16_i32_15 : i32 to vector<1x256xi32>
    %44 = arith.cmpi slt, %42, %43 : vector<1x256xi32>
    %45 = arith.andi %40, %44 : vector<1x256xi1>
    %46 = arith.extui %45 : vector<1x256xi1> to vector<1x256xi32>
    %47 = arith.sitofp %46 : vector<1x256xi32> to vector<1x256xf32>
    %48 = vector.broadcast %47 : vector<1x256xf32> to vector<4x256xf32>
    %49 = arith.mulf %36, %48 : vector<4x256xf32>
    %50 = vector.extract_strided_slice %20 {offsets = [0, 16], sizes = [4, 256], strides = [1, 1]} : vector<4x290xf32> to vector<4x256xf32>
    %c-1_i32_16 = arith.constant -1 : i32
    %51 = vector.broadcast %c-1_i32_16 : i32 to vector<1x256xi32>
    %52 = arith.addi %16, %51 : vector<1x256xi32>
    %c0_i32_17 = arith.constant 0 : i32
    %53 = vector.broadcast %c0_i32_17 : i32 to vector<1x256xi32>
    %54 = arith.cmpi sge, %52, %53 : vector<1x256xi32>
    %c-1_i32_18 = arith.constant -1 : i32
    %55 = vector.broadcast %c-1_i32_18 : i32 to vector<1x256xi32>
    %56 = arith.addi %16, %55 : vector<1x256xi32>
    %c16_i32_19 = arith.constant 16 : i32
    %57 = vector.broadcast %c16_i32_19 : i32 to vector<1x256xi32>
    %58 = arith.cmpi slt, %56, %57 : vector<1x256xi32>
    %59 = arith.andi %54, %58 : vector<1x256xi1>
    %60 = arith.extui %59 : vector<1x256xi1> to vector<1x256xi32>
    %61 = arith.sitofp %60 : vector<1x256xi32> to vector<1x256xf32>
    %62 = vector.broadcast %61 : vector<1x256xf32> to vector<4x256xf32>
    %63 = arith.mulf %50, %62 : vector<4x256xf32>
    %64 = vector.extract_strided_slice %20 {offsets = [0, 17], sizes = [4, 256], strides = [1, 1]} : vector<4x290xf32> to vector<4x256xf32>
    %65 = vector.extract_strided_slice %20 {offsets = [0, 18], sizes = [4, 256], strides = [1, 1]} : vector<4x290xf32> to vector<4x256xf32>
    %c1_i32_20 = arith.constant 1 : i32
    %66 = vector.broadcast %c1_i32_20 : i32 to vector<1x256xi32>
    %67 = arith.addi %16, %66 : vector<1x256xi32>
    %c0_i32_21 = arith.constant 0 : i32
    %68 = vector.broadcast %c0_i32_21 : i32 to vector<1x256xi32>
    %69 = arith.cmpi sge, %67, %68 : vector<1x256xi32>
    %c1_i32_22 = arith.constant 1 : i32
    %70 = vector.broadcast %c1_i32_22 : i32 to vector<1x256xi32>
    %71 = arith.addi %16, %70 : vector<1x256xi32>
    %c16_i32_23 = arith.constant 16 : i32
    %72 = vector.broadcast %c16_i32_23 : i32 to vector<1x256xi32>
    %73 = arith.cmpi slt, %71, %72 : vector<1x256xi32>
    %74 = arith.andi %69, %73 : vector<1x256xi1>
    %75 = arith.extui %74 : vector<1x256xi1> to vector<1x256xi32>
    %76 = arith.sitofp %75 : vector<1x256xi32> to vector<1x256xf32>
    %77 = vector.broadcast %76 : vector<1x256xf32> to vector<4x256xf32>
    %78 = arith.mulf %65, %77 : vector<4x256xf32>
    %79 = vector.extract_strided_slice %20 {offsets = [0, 32], sizes = [4, 256], strides = [1, 1]} : vector<4x290xf32> to vector<4x256xf32>
    %c-1_i32_24 = arith.constant -1 : i32
    %80 = vector.broadcast %c-1_i32_24 : i32 to vector<1x256xi32>
    %81 = arith.addi %16, %80 : vector<1x256xi32>
    %c0_i32_25 = arith.constant 0 : i32
    %82 = vector.broadcast %c0_i32_25 : i32 to vector<1x256xi32>
    %83 = arith.cmpi sge, %81, %82 : vector<1x256xi32>
    %c-1_i32_26 = arith.constant -1 : i32
    %84 = vector.broadcast %c-1_i32_26 : i32 to vector<1x256xi32>
    %85 = arith.addi %16, %84 : vector<1x256xi32>
    %c16_i32_27 = arith.constant 16 : i32
    %86 = vector.broadcast %c16_i32_27 : i32 to vector<1x256xi32>
    %87 = arith.cmpi slt, %85, %86 : vector<1x256xi32>
    %88 = arith.andi %83, %87 : vector<1x256xi1>
    %89 = arith.extui %88 : vector<1x256xi1> to vector<1x256xi32>
    %90 = arith.sitofp %89 : vector<1x256xi32> to vector<1x256xf32>
    %91 = vector.broadcast %90 : vector<1x256xf32> to vector<4x256xf32>
    %92 = arith.mulf %79, %91 : vector<4x256xf32>
    %93 = vector.extract_strided_slice %20 {offsets = [0, 33], sizes = [4, 256], strides = [1, 1]} : vector<4x290xf32> to vector<4x256xf32>
    %94 = vector.extract_strided_slice %20 {offsets = [0, 34], sizes = [4, 256], strides = [1, 1]} : vector<4x290xf32> to vector<4x256xf32>
    %c1_i32_28 = arith.constant 1 : i32
    %95 = vector.broadcast %c1_i32_28 : i32 to vector<1x256xi32>
    %96 = arith.addi %16, %95 : vector<1x256xi32>
    %c0_i32_29 = arith.constant 0 : i32
    %97 = vector.broadcast %c0_i32_29 : i32 to vector<1x256xi32>
    %98 = arith.cmpi sge, %96, %97 : vector<1x256xi32>
    %c1_i32_30 = arith.constant 1 : i32
    %99 = vector.broadcast %c1_i32_30 : i32 to vector<1x256xi32>
    %100 = arith.addi %16, %99 : vector<1x256xi32>
    %c16_i32_31 = arith.constant 16 : i32
    %101 = vector.broadcast %c16_i32_31 : i32 to vector<1x256xi32>
    %102 = arith.cmpi slt, %100, %101 : vector<1x256xi32>
    %103 = arith.andi %98, %102 : vector<1x256xi1>
    %104 = arith.extui %103 : vector<1x256xi1> to vector<1x256xi32>
    %105 = arith.sitofp %104 : vector<1x256xi32> to vector<1x256xf32>
    %106 = vector.broadcast %105 : vector<1x256xf32> to vector<4x256xf32>
    %107 = arith.mulf %94, %106 : vector<4x256xf32>
    %108 = tpu.concatenate %34, %35, %49, %63, %64, %78, %92, %93, %107 in 0 : vector<4x256xf32>, vector<4x256xf32>, vector<4x256xf32>, vector<4x256xf32>, vector<4x256xf32>, vector<4x256xf32>, vector<4x256xf32>, vector<4x256xf32>, vector<4x256xf32> -> vector<36x256xf32>
    %cst = arith.constant dense<0.000000e+00> : vector<8x256xf32>
    %109 = tpu.matmul %18, %108, %cst {dimension_numbers = #tpu.dot_dimension_numbers<[1], [0], [0], [1], [0, 0, 1, 1], [], []>} : vector<8x36xf32>, vector<36x256xf32>, vector<8x256xf32> -> vector<8x256xf32>
    %110 = vector.broadcast %17 : vector<8x1xf32> to vector<8x256xf32>
    %111 = arith.addf %109, %110 : vector<8x256xf32>
    %112 = arith.negf %111 : vector<8x256xf32>
    %113 = math.exp %112 : vector<8x256xf32>
    %cst_32 = arith.constant 1.000000e+00 : f32
    %114 = vector.broadcast %cst_32 : f32 to vector<8x256xf32>
    %115 = arith.addf %114, %113 : vector<8x256xf32>
    %116 = arith.divf %114, %115 : vector<8x256xf32>
    %117 = arith.mulf %111, %116 : vector<8x256xf32>
    %c0_33 = arith.constant 0 : index
    %c0_34 = arith.constant 0 : index
    %c0_35 = arith.constant 0 : index
    %118 = vector.load %arg4[%c0_33, %c0_34, %c0_35] : memref<2x8x256xf32, #tpu.memory_space<vmem>>, vector<1x8x256xf32>
    %119 = vector.shape_cast %118 : vector<1x8x256xf32> to vector<8x256xf32>
    %120 = vector.shape_cast %117 : vector<8x256xf32> to vector<1x8x256xf32>
    tpu.vector_store %arg4[%c0_33, %c0_34, %c0_35], %120 {strides = array<i32>} : memref<2x8x256xf32, #tpu.memory_space<vmem>>, vector<1x8x256xf32>,
    %c1 = arith.constant 1 : index
    %c0_36 = arith.constant 0 : index
    %c0_37 = arith.constant 0 : index
    %121 = vector.load %arg1[%c1, %c0_36, %c0_37] : memref<2x4x290xf32, #tpu.memory_space<vmem>>, vector<1x4x290xf32>
    %122 = vector.shape_cast %121 : vector<1x4x290xf32> to vector<4x290xf32>
    %123 = vector.extract_strided_slice %122 {offsets = [0, 0], sizes = [4, 256], strides = [1, 1]} : vector<4x290xf32> to vector<4x256xf32>
    %c-1_i32_38 = arith.constant -1 : i32
    %124 = vector.broadcast %c-1_i32_38 : i32 to vector<1x256xi32>
    %125 = arith.addi %16, %124 : vector<1x256xi32>
    %c0_i32_39 = arith.constant 0 : i32
    %126 = vector.broadcast %c0_i32_39 : i32 to vector<1x256xi32>
    %127 = arith.cmpi sge, %125, %126 : vector<1x256xi32>
    %c-1_i32_40 = arith.constant -1 : i32
    %128 = vector.broadcast %c-1_i32_40 : i32 to vector<1x256xi32>
    %129 = arith.addi %16, %128 : vector<1x256xi32>
    %c16_i32_41 = arith.constant 16 : i32
    %130 = vector.broadcast %c16_i32_41 : i32 to vector<1x256xi32>
    %131 = arith.cmpi slt, %129, %130 : vector<1x256xi32>
    %132 = arith.andi %127, %131 : vector<1x256xi1>
    %133 = arith.extui %132 : vector<1x256xi1> to vector<1x256xi32>
    %134 = arith.sitofp %133 : vector<1x256xi32> to vector<1x256xf32>
    %135 = vector.broadcast %134 : vector<1x256xf32> to vector<4x256xf32>
    %136 = arith.mulf %123, %135 : vector<4x256xf32>
    %137 = vector.extract_strided_slice %122 {offsets = [0, 1], sizes = [4, 256], strides = [1, 1]} : vector<4x290xf32> to vector<4x256xf32>
    %138 = vector.extract_strided_slice %122 {offsets = [0, 2], sizes = [4, 256], strides = [1, 1]} : vector<4x290xf32> to vector<4x256xf32>
    %c1_i32_42 = arith.constant 1 : i32
    %139 = vector.broadcast %c1_i32_42 : i32 to vector<1x256xi32>
    %140 = arith.addi %16, %139 : vector<1x256xi32>
    %c0_i32_43 = arith.constant 0 : i32
    %141 = vector.broadcast %c0_i32_43 : i32 to vector<1x256xi32>
    %142 = arith.cmpi sge, %140, %141 : vector<1x256xi32>
    %c1_i32_44 = arith.constant 1 : i32
    %143 = vector.broadcast %c1_i32_44 : i32 to vector<1x256xi32>
    %144 = arith.addi %16, %143 : vector<1x256xi32>
    %c16_i32_45 = arith.constant 16 : i32
    %145 = vector.broadcast %c16_i32_45 : i32 to vector<1x256xi32>
    %146 = arith.cmpi slt, %144, %145 : vector<1x256xi32>
    %147 = arith.andi %142, %146 : vector<1x256xi1>
    %148 = arith.extui %147 : vector<1x256xi1> to vector<1x256xi32>
    %149 = arith.sitofp %148 : vector<1x256xi32> to vector<1x256xf32>
    %150 = vector.broadcast %149 : vector<1x256xf32> to vector<4x256xf32>
    %151 = arith.mulf %138, %150 : vector<4x256xf32>
    %152 = vector.extract_strided_slice %122 {offsets = [0, 16], sizes = [4, 256], strides = [1, 1]} : vector<4x290xf32> to vector<4x256xf32>
    %c-1_i32_46 = arith.constant -1 : i32
    %153 = vector.broadcast %c-1_i32_46 : i32 to vector<1x256xi32>
    %154 = arith.addi %16, %153 : vector<1x256xi32>
    %c0_i32_47 = arith.constant 0 : i32
    %155 = vector.broadcast %c0_i32_47 : i32 to vector<1x256xi32>
    %156 = arith.cmpi sge, %154, %155 : vector<1x256xi32>
    %c-1_i32_48 = arith.constant -1 : i32
    %157 = vector.broadcast %c-1_i32_48 : i32 to vector<1x256xi32>
    %158 = arith.addi %16, %157 : vector<1x256xi32>
    %c16_i32_49 = arith.constant 16 : i32
    %159 = vector.broadcast %c16_i32_49 : i32 to vector<1x256xi32>
    %160 = arith.cmpi slt, %158, %159 : vector<1x256xi32>
    %161 = arith.andi %156, %160 : vector<1x256xi1>
    %162 = arith.extui %161 : vector<1x256xi1> to vector<1x256xi32>
    %163 = arith.sitofp %162 : vector<1x256xi32> to vector<1x256xf32>
    %164 = vector.broadcast %163 : vector<1x256xf32> to vector<4x256xf32>
    %165 = arith.mulf %152, %164 : vector<4x256xf32>
    %166 = vector.extract_strided_slice %122 {offsets = [0, 17], sizes = [4, 256], strides = [1, 1]} : vector<4x290xf32> to vector<4x256xf32>
    %167 = vector.extract_strided_slice %122 {offsets = [0, 18], sizes = [4, 256], strides = [1, 1]} : vector<4x290xf32> to vector<4x256xf32>
    %c1_i32_50 = arith.constant 1 : i32
    %168 = vector.broadcast %c1_i32_50 : i32 to vector<1x256xi32>
    %169 = arith.addi %16, %168 : vector<1x256xi32>
    %c0_i32_51 = arith.constant 0 : i32
    %170 = vector.broadcast %c0_i32_51 : i32 to vector<1x256xi32>
    %171 = arith.cmpi sge, %169, %170 : vector<1x256xi32>
    %c1_i32_52 = arith.constant 1 : i32
    %172 = vector.broadcast %c1_i32_52 : i32 to vector<1x256xi32>
    %173 = arith.addi %16, %172 : vector<1x256xi32>
    %c16_i32_53 = arith.constant 16 : i32
    %174 = vector.broadcast %c16_i32_53 : i32 to vector<1x256xi32>
    %175 = arith.cmpi slt, %173, %174 : vector<1x256xi32>
    %176 = arith.andi %171, %175 : vector<1x256xi1>
    %177 = arith.extui %176 : vector<1x256xi1> to vector<1x256xi32>
    %178 = arith.sitofp %177 : vector<1x256xi32> to vector<1x256xf32>
    %179 = vector.broadcast %178 : vector<1x256xf32> to vector<4x256xf32>
    %180 = arith.mulf %167, %179 : vector<4x256xf32>
    %181 = vector.extract_strided_slice %122 {offsets = [0, 32], sizes = [4, 256], strides = [1, 1]} : vector<4x290xf32> to vector<4x256xf32>
    %c-1_i32_54 = arith.constant -1 : i32
    %182 = vector.broadcast %c-1_i32_54 : i32 to vector<1x256xi32>
    %183 = arith.addi %16, %182 : vector<1x256xi32>
    %c0_i32_55 = arith.constant 0 : i32
    %184 = vector.broadcast %c0_i32_55 : i32 to vector<1x256xi32>
    %185 = arith.cmpi sge, %183, %184 : vector<1x256xi32>
    %c-1_i32_56 = arith.constant -1 : i32
    %186 = vector.broadcast %c-1_i32_56 : i32 to vector<1x256xi32>
    %187 = arith.addi %16, %186 : vector<1x256xi32>
    %c16_i32_57 = arith.constant 16 : i32
    %188 = vector.broadcast %c16_i32_57 : i32 to vector<1x256xi32>
    %189 = arith.cmpi slt, %187, %188 : vector<1x256xi32>
    %190 = arith.andi %185, %189 : vector<1x256xi1>
    %191 = arith.extui %190 : vector<1x256xi1> to vector<1x256xi32>
    %192 = arith.sitofp %191 : vector<1x256xi32> to vector<1x256xf32>
    %193 = vector.broadcast %192 : vector<1x256xf32> to vector<4x256xf32>
    %194 = arith.mulf %181, %193 : vector<4x256xf32>
    %195 = vector.extract_strided_slice %122 {offsets = [0, 33], sizes = [4, 256], strides = [1, 1]} : vector<4x290xf32> to vector<4x256xf32>
    %196 = vector.extract_strided_slice %122 {offsets = [0, 34], sizes = [4, 256], strides = [1, 1]} : vector<4x290xf32> to vector<4x256xf32>
    %c1_i32_58 = arith.constant 1 : i32
    %197 = vector.broadcast %c1_i32_58 : i32 to vector<1x256xi32>
    %198 = arith.addi %16, %197 : vector<1x256xi32>
    %c0_i32_59 = arith.constant 0 : i32
    %199 = vector.broadcast %c0_i32_59 : i32 to vector<1x256xi32>
    %200 = arith.cmpi sge, %198, %199 : vector<1x256xi32>
    %c1_i32_60 = arith.constant 1 : i32
    %201 = vector.broadcast %c1_i32_60 : i32 to vector<1x256xi32>
    %202 = arith.addi %16, %201 : vector<1x256xi32>
    %c16_i32_61 = arith.constant 16 : i32
    %203 = vector.broadcast %c16_i32_61 : i32 to vector<1x256xi32>
    %204 = arith.cmpi slt, %202, %203 : vector<1x256xi32>
    %205 = arith.andi %200, %204 : vector<1x256xi1>
    %206 = arith.extui %205 : vector<1x256xi1> to vector<1x256xi32>
    %207 = arith.sitofp %206 : vector<1x256xi32> to vector<1x256xf32>
    %208 = vector.broadcast %207 : vector<1x256xf32> to vector<4x256xf32>
    %209 = arith.mulf %196, %208 : vector<4x256xf32>
    %210 = tpu.concatenate %136, %137, %151, %165, %166, %180, %194, %195, %209 in 0 : vector<4x256xf32>, vector<4x256xf32>, vector<4x256xf32>, vector<4x256xf32>, vector<4x256xf32>, vector<4x256xf32>, vector<4x256xf32>, vector<4x256xf32>, vector<4x256xf32> -> vector<36x256xf32>
    %cst_62 = arith.constant dense<0.000000e+00> : vector<8x256xf32>
    %211 = tpu.matmul %18, %210, %cst_62 {dimension_numbers = #tpu.dot_dimension_numbers<[1], [0], [0], [1], [0, 0, 1, 1], [], []>} : vector<8x36xf32>, vector<36x256xf32>, vector<8x256xf32> -> vector<8x256xf32>
    %212 = vector.broadcast %17 : vector<8x1xf32> to vector<8x256xf32>
    %213 = arith.addf %211, %212 : vector<8x256xf32>
    %214 = arith.negf %213 : vector<8x256xf32>
    %215 = math.exp %214 : vector<8x256xf32>
    %cst_63 = arith.constant 1.000000e+00 : f32
    %216 = vector.broadcast %cst_63 : f32 to vector<8x256xf32>
    %217 = arith.addf %216, %215 : vector<8x256xf32>
    %218 = arith.divf %216, %217 : vector<8x256xf32>
    %219 = arith.mulf %213, %218 : vector<8x256xf32>
    %c1_64 = arith.constant 1 : index
    %c0_65 = arith.constant 0 : index
    %c0_66 = arith.constant 0 : index
    %220 = vector.load %arg4[%c1_64, %c0_65, %c0_66] : memref<2x8x256xf32, #tpu.memory_space<vmem>>, vector<1x8x256xf32>
    %221 = vector.shape_cast %220 : vector<1x8x256xf32> to vector<8x256xf32>
    %222 = vector.shape_cast %219 : vector<8x256xf32> to vector<1x8x256xf32>
    tpu.vector_store %arg4[%c1_64, %c0_65, %c0_66], %222 {strides = array<i32>} : memref<2x8x256xf32, #tpu.memory_space<vmem>>, vector<1x8x256xf32>,
    return
  }
  func.func @transform_0(%arg0: i32) -> (i32, i32, i32) {
    %c0_i32 = arith.constant 0 : i32
    %c0_i32_0 = arith.constant 0 : i32
    %c0_i32_1 = arith.constant 0 : i32
    return %arg0, %c0_i32, %c0_i32_0 : i32, i32, i32
  }
  func.func @transform_1(%arg0: i32) -> (i32, i32) {
    %c0_i32 = arith.constant 0 : i32
    %c0_i32_0 = arith.constant 0 : i32
    %c0_i32_1 = arith.constant 0 : i32
    return %c0_i32, %c0_i32_0 : i32, i32
  }
  func.func @transform_2(%arg0: i32) -> (i32, i32) {
    %c0_i32 = arith.constant 0 : i32
    %c0_i32_0 = arith.constant 0 : i32
    %c0_i32_1 = arith.constant 0 : i32
    return %c0_i32, %c0_i32_0 : i32, i32
  }
  func.func @transform_3(%arg0: i32) -> (i32, i32, i32) {
    %c0_i32 = arith.constant 0 : i32
    %c0_i32_0 = arith.constant 0 : i32
    %c0_i32_1 = arith.constant 0 : i32
    return %arg0, %c0_i32, %c0_i32_0 : i32, i32, i32
  }
}

</mosaic_0001>

<bundles_post_ra>
// kernel: tpu_custom_call.1
= control target key start
LH: loop header
LB: loop body
LE: loop exit
PB: predicated region body
PF: predicated region fallthrough
CT: control target
= control target key end

     0   :  { %8 = vsyncpa [#allocation3], 0  ;;  %s1096_s0 = inlined_call_operand.hbm [shape: f32[2,4,290], index: 0, kind: input, shape index: {}]   ;;  %s1097_s1 = inlined_call_operand.vmem [shape: f32[8,36], index: 1, kind: input, shape index: {}]   ;;  %s1098_s2 = inlined_call_operand.vmem [shape: f32[8,1], index: 2, kind: input, shape index: {}]   ;;  %s1099_s3 = inlined_call_operand.hbm [shape: f32[2,8,256], index: 3, kind: output, shape index: {}]  }
   0x1   :  { %9 = vsyncpa [#allocation4], 0  ;;  %s817_s12 = smov [#allocation2]   ;;  %s769_s16 = scalar_lea.hbm %s1096_s0, 384 }
   0x2   :  { %s15_s13 = sshll.u32 %s817_s12, 4  ;;  %p770_p0 = scmp.ne.s32.totalorder %s1096_s0, %s769_s16  ;;  %s16_s13 = int_to_ptr.vmem [resolvable:$true] %s15_s13 }
   0x3   :  { %p773_p1 = scmp.lt.u32.totalorder %s769_s16, %s1096_s0 }
   0x5   :  { %p775_p2 = pnand %p773_p1, %p770_p0 }
   0x7   :  { %778 = shalt.err (!%p775_p2)
}
   0x8   :  { %s779_s21 = scalar_lea.vmem %s16_s13, 384  ;;  %p784_p4 = scmp.lt.s32.totalorder %s16_s13, %s16_s13 }
   0x9   :  { %p780_p3 = scmp.ne.s32.totalorder %s16_s13, %s779_s21  ;;  %p785_p5 = scmp.lt.s32.totalorder %s779_s21, %s779_s21 }
   0xb   :  { %p786_p6 = por %p785_p5, %p784_p4 }
   0xd   :  { %p787_p7 = pnand %p786_p6, %p780_p3 }
   0xf   :  { %790 = shalt.err (!%p787_p7)
}
  0x10   :  { %s818_s22 = smov 192   ;;  %s819_s23 = smov 12   ;;  %v29_v0 = vlaneseq }
  0x11   :  { %21 = dma.hbm_to_vmem [thread:$0]  %s1096_s0, 384, %s16_s13, [#allocation3], %s818_s22, %s818_s22, %s819_s23  }
  0x12   :  { %813 = dma.done.wait [#allocation3], 384  }
  0x13   :  { %814 = vsyncadd [#allocation3], 4294966912  ;;  %v820_v1 = vmov 0.0   ;;  %v30_v2 = vand.u32 127, %v29_v0  ;;  %v869_v14 = vld [vmem:[#allocation2 + $0x8] sm:$0xf] }
  0x14   :  { %334 = vmatprep.mubr.f32.mxu0 %v820_v1  ;;  %550 = vmatprep.mubr.f32.mxu1 %v820_v1  ;;  %s821_s0 = smov 2   ;;  %s822_s26 = smov 32   ;;  %v143_v17 = vcombine.low %v869_v14, %v869_v14  ;;  %v876_v18 = vld [vmem:[#allocation2] sm:$0xff]  ;;  %v878_v19 = vld [vmem:[#allocation2 + $0xc] sm:$0xff]  ;;  %v880_v20 = vld [vmem:[#allocation2 + $0x14] sm:$0xf] }
  0x15   :  { %v31_v3 = vadd.s32 128, %v30_v2  ;;  %v36_v4 = vand.u32 15, %v30_v2  ;;  %v142_v21 = vcombine.low %v876_v18, %v876_v18  ;;  %s823_s27 = smov 16   ;;  %s824_s28 = smov 18   ;;  %v376_v23 = vcombine.low %v878_v19, %v878_v19 }
  0x16   :  { %v641_v22 = vpack.i.bf16 %v143_v17, %v876_v18  ;;  %v377_v24 = vcombine.low %v880_v20, %v880_v20  ;;  %s825_s29 = smov 34   ;;  %s826_s30 = smov 127   ;;  %v184_v27 = vcombine.high %v876_v18, %v876_v18  ;;  %v415_v29 = vcombine.high %v878_v19, %v878_v19 }
  0x17   :  { %v43_v5 = vand.u32 15, %v31_v3  ;;  %v77_v6 = vadd.s32 1, %v36_v4  ;;  %v60_v7 = vadd.s32 4294967295, %v36_v4  ;;  %v651_v25 = vpack.i.bf16 %v376_v23, %v142_v21  ;;  %s827_s4 = smov 95   ;;  %s828_s5 = smov 111  }
  0x18   :  { %v646_v26 = vpack.i.bf16 %v377_v24, %v878_v19  ;;  %v656_v28 = vpack.i.bf16 %v869_v14, %v184_v27  ;;  %v666_v30 = vpack.i.bf16 %v880_v20, %v415_v29  ;;  %v676_v31 = vpack.i.bf16 %v878_v19, %v876_v18  ;;  %s829_s6 = smov 126   ;;  %s830_s7 = smov 96  }
  0x19   :  { %v78_v8 = vadd.s32 1, %v43_v5  ;;  %vm81_vm0 = vcmp.lt.s32.totalorder %v77_v6, 16  ;;  %v61_v9 = vadd.s32 4294967295, %v43_v5  ;;  %vm62_vm1 = vcmp.ge.s32.totalorder %v60_v7, 0  ;;  %s831_s8 = smov 94   ;;  %s832_s9 = smov 112  }
  0x1a   :  { %v593_v10 = vsel %vm81_vm0, 1.0, %v820_v1  ;;  %v591_v11 = vsel %vm62_vm1, 1.0, %v820_v1  ;;  %vm95_vm4 = vcmask 15360   ;;  %vm122_vm5 = vcmask 261120   ;;  %s833_s10 = smov 110  }
  0x1b   :  { %vm82_vm2 = vcmp.lt.s32.totalorder %v78_v8, 16  ;;  %vm63_vm3 = vcmp.ge.s32.totalorder %v61_v9, 0  ;;  %vm104_vm6 = vcmask 130048   ;;  %vm113_vm7 = vcmask 146432  }
  0x1c   :  { %v594_v12 = vsel %vm82_vm2, 1.0, %v820_v1  ;;  %v592_v13 = vsel %vm63_vm3, 1.0, %v820_v1  ;;  %vm131_vm8 = vcmask 277504   ;;  %vm231_vm9 = vcmask 777216  }
  0x1d   :  { %v91_v15 = vcombine.low %v593_v10, %v594_v12  ;;  %v871_v16 = vcombine.low %v591_v11, %v592_v13  ;;  %vm191_vm10 = vcmask 908288   ;;  %vm150_vm11 = vcmask 1039360  }
  0x1e   :  { %vm248_vm12 = vcmask 1043456   ;;  %vm164_vm13 = vcmask 1031168   ;;  %vm179_vm14 = vcmask 916480   ;;  %vm206_vm15 = vcmask 900096  }
  0x1f   :  { %92 = vrot.lane.b32.xlu0 %v91_v15, %s821_s0  ;;  %119 = vrot.lane.b32.xlu1 %v871_v16, %s822_s26  ;;  %vm220_vm0 = vcmask 785408   ;;  %vm245_vm1 = vcmask 769024   ;;  %vm262_vm2 = vcmask 293888  }
  0x23   :  { %101 = vrot.lane.b32.xlu0 %v871_v16, %s823_s27  ;;  %110 = vrot.lane.b32.xlu1 %v91_v15, %s824_s28 }
  0x27   :  { %128 = vrot.lane.b32.xlu0 %v91_v15, %s825_s29  ;;  %642 = vrot.lane.b32.xlu1 %v641_v22, %s826_s30 }
  0x2b   :  { %652 = vrot.lane.b32.xlu1 %v651_v25, %s826_s30  ;;  %647 = vrot.lane.b32.xlu0 %v646_v26, %s826_s30 }
  0x2f   :  { %662 = vrot.lane.b32.xlu1 %v641_v22, %s827_s4  ;;  %657 = vrot.lane.b32.xlu0 %v656_v28, %s828_s5 }
  0x33   :  { %672 = vrot.lane.b32.xlu1 %v646_v26, %s827_s4  ;;  %667 = vrot.lane.b32.xlu0 %v666_v30, %s828_s5 }
  0x37   :  { %682 = vrot.lane.b32.xlu1 %v651_v25, %s827_s4  ;;  %677 = vrot.lane.b32.xlu0 %v676_v31, %s828_s5 }
  0x91   :  { %v93_v32 = vpop.permute.xlu0 %92  ;;  %v120_v33 = vpop.permute.xlu1 %119 }
  0x92   :  { %v94_v34 = vrot.slane %v93_v32, 4  ;;  %v121_v35 = vrot.slane %v120_v33, 4 }
  0x94   :  { %v96_v36 = vsel %vm95_vm4, %v94_v34, %v93_v32  ;;  %v123_v37 = vsel %vm122_vm5, %v121_v35, %v120_v33  ;;  %v100_v2 = vmul.f32 %v94_v34, %v869_v14  ;;  %v127_v4 = vmul.f32 %v121_v35, %v869_v14 }
  0x95   :  { %v99_v38 = vmul.f32 %v96_v36, %v876_v18  ;;  %v902_v39 = vmul.f32 %v878_v19, %v96_v36  ;;  %v102_v40 = vpop.permute.xlu0 %101  ;;  %v111_v41 = vpop.permute.xlu1 %110  ;;  %v126_v43 = vmul.f32 %v123_v37, %v876_v18  ;;  %v367_v44 = vmul.f32 %v878_v19, %v123_v37 }
  0x96   :  { %v103_v42 = vrot.slane %v102_v40, 4  ;;  %v112_v48 = vrot.slane %v111_v41, 4  ;;  %v368_v9 = vmul.f32 %v880_v20, %v121_v35  ;;  %v362_v15 = vmul.f32 %v880_v20, %v94_v34  ;;  %v56_v34 = vld [vmem:[%s1098_s2] sm:$0xff] }
  0x97   :  { %v686_v47 = vpack.i.bf16 %v902_v39, %v99_v38  ;;  %v691_v54 = vpack.i.bf16 %v367_v44, %v126_v43  ;;  %v157_v60 = vcombine.high %v99_v38, %v99_v38  ;;  %v213_v3 = vcombine.high %v126_v43, %v126_v43 }
  0x98   :  { %v105_v45 = vsel %vm104_vm6, %v103_v42, %v102_v40  ;;  %v364_v46 = vmul.f32 %v880_v20, %v103_v42  ;;  %v109_v49 = vmul.f32 %v103_v42, %v869_v14  ;;  %v114_v55 = vsel %vm113_vm7, %v112_v48, %v111_v41 }
  0x99   :  { %v129_v50 = vpop.permute.xlu0 %128  ;;  %687 = vrot.lane.b32.xlu0 %v686_v47, %s829_s6  ;;  %v108_v52 = vmul.f32 %v105_v45, %v876_v18  ;;  %v363_v53 = vmul.f32 %v878_v19, %v105_v45  ;;  %v118_v56 = vmul.f32 %v112_v48, %v869_v14  ;;  %v117_v61 = vmul.f32 %v114_v55, %v876_v18  ;;  %v643_v35 = vpop.permute.xlu1 %642 }
  0x9a   :  { %v909_v51 = vrot.slane %v129_v50, 4  ;;  %v404_v58 = vcombine.low %v364_v46, %v364_v46  ;;  %v172_v59 = vcombine.low %v109_v49, %v109_v49  ;;  %v366_v62 = vmul.f32 %v880_v20, %v112_v48 }
  0x9b   :  { %v199_v1 = vcombine.low %v118_v56, %v118_v56  ;;  %v365_v5 = vmul.f32 %v878_v19, %v114_v55  ;;  %v716_v6 = vpack.i.bf16 %v100_v2, %v157_v60  ;;  %v390_v10 = vcombine.high %v902_v39, %v902_v39 }
  0x9c   :  { %v136_v57 = vmul.f32 %v909_v51, %v869_v14  ;;  %v701_v63 = vpack.i.bf16 %v404_v58, %v363_v53  ;;  %v696_v0 = vpack.i.bf16 %v172_v59, %v108_v52  ;;  %v429_v8 = vcombine.low %v366_v62, %v366_v62 }
  0x9d   :  { %692 = vrot.lane.b32.xlu0 %v691_v54, %s830_s7  ;;  %v706_v7 = vpack.i.bf16 %v199_v1, %v117_v61  ;;  %v442_v11 = vcombine.high %v367_v44, %v367_v44  ;;  %v731_v12 = vpack.i.bf16 %v127_v4, %v213_v3  ;;  %v132_v14 = vsel %vm131_vm8, %v909_v51, %v129_v50  ;;  %v648_v36 = vpop.permute.xlu0 %647  ;;  %v653_v37 = vpop.permute.xlu1 %652 }
  0x9e   :  { %243 = vrot.lane.b32.xlu1 %v136_v57, %s831_s8  ;;  %v711_v13 = vpack.i.bf16 %v429_v8, %v365_v5  ;;  %v171_v17 = vcombine.low %v108_v52, %v108_v52  ;;  %v403_v21 = vcombine.low %v363_v53, %v363_v53  ;;  %v135_v22 = vmul.f32 %v132_v14, %v876_v18 }
  0x9f   :  { %v736_v23 = vpack.i.bf16 %v368_v9, %v442_v11  ;;  %v721_v24 = vpack.i.bf16 %v362_v15, %v390_v10  ;;  %v198_v25 = vcombine.low %v117_v61, %v117_v61  ;;  %v369_v26 = vmul.f32 %v878_v19, %v132_v14 }
  0xa0   :  { %v428_v27 = vcombine.low %v365_v5, %v365_v5  ;;  %v238_v28 = vcombine.high %v135_v22, %v135_v22  ;;  %v726_v29 = vpack.i.bf16 %v403_v21, %v171_v17  ;;  %v834_v32 = vmov 0  }
  0xa1   :  { %702 = vrot.lane.b32.xlu0 %v701_v63, %s832_s9  ;;  %v465_v30 = vcombine.high %v369_v26, %v369_v26  ;;  %v370_v33 = vmul.f32 %v880_v20, %v909_v51  ;;  %v951_v38 = vpop.permute.xlu0 %657  ;;  %v953_v39 = vpop.permute.xlu1 %662  ;;  %v76_v44 = vmul.f32 %v871_v16, %v876_v18  ;;  %v360_v47 = vmul.f32 %v878_v19, %v871_v16 }
  0xa2   :  { %697 = vrot.lane.b32.xlu1 %v696_v0, %s832_s9  ;;  %v741_v31 = vpack.i.bf16 %v428_v27, %v198_v25  ;;  %746 = vset.pattern.permute.xlu0 %v834_v32  ;;  %v645_v49 = vunpack.i.h.bf16 %v643_v35  ;;  %v644_v50 = vunpack.i.l.bf16 %v643_v35  ;;  %v655_v18 = vunpack.i.h.bf16 %v653_v37 }
  0xa3   :  { %v138_v48 = vcombine.high %v76_v44, %v76_v44  ;;  %v372_v53 = vcombine.high %v360_v47, %v360_v47  ;;  %v654_v54 = vunpack.i.l.bf16 %v653_v37  ;;  %v650_v55 = vunpack.i.h.bf16 %v648_v36 }
  0xa4   :  { %v649_v56 = vunpack.i.l.bf16 %v648_v36  ;;  %v665_v57 = vunpack.i.h.bf16 %v953_v39  ;;  %v664_v16 = vunpack.i.l.bf16 %v953_v39  ;;  %v660_v19 = vunpack.i.h.bf16 %v951_v38 }
  0xa5   :  { %717 = vrot.lane.b32.xlu0 %v716_v6, %s829_s6  ;;  %v955_v40 = vpop.permute.xlu0 %667  ;;  %v957_v20 = vpop.permute.xlu1 %672  ;;  %v659_v58 = vunpack.i.l.bf16 %v951_v38  ;;  %v152_v5 = vsel %vm150_vm11, %v644_v50, %v645_v49  ;;  %v151_v8 = vsel %vm150_vm11, %v654_v54, %v644_v50 }
  0xa6   :  { %707 = vrot.lane.b32.xlu1 %v706_v7, %s833_s10  ;;  %v675_v61 = vunpack.i.h.bf16 %v957_v20  ;;  %v674_v62 = vunpack.i.l.bf16 %v957_v20  ;;  %v670_v63 = vunpack.i.h.bf16 %v955_v40  ;;  %v669_v0 = vunpack.i.l.bf16 %v955_v40 }
  0xa7   :  { %v385_v6 = vsel %vm150_vm11, %v649_v56, %v650_v55  ;;  %v384_v7 = vsel %vm150_vm11, %v655_v18, %v649_v56  ;;  %v233_v9 = vsel %vm231_vm9, %v664_v16, %v665_v57  ;;  %v193_v10 = vsel %vm191_vm10, %v659_v58, %v660_v19 }
  0xa8   :  { %v423_v14 = vsel %vm191_vm10, %v669_v0, %v670_v63  ;;  %v250_v21 = vsel %vm248_vm12, %v138_v48, %v152_v5  ;;  %v1016_v25 = vsel %vm248_vm12, %v360_v47, %v384_v7 }
  0xa9   :  { %732 = vrot.lane.b32.xlu0 %v731_v12, %s830_s7  ;;  %v959_v41 = vpop.permute.xlu0 %677  ;;  %v961_v42 = vpop.permute.xlu1 %682 }
  0xaa   :  { %712 = vrot.lane.b32.xlu1 %v711_v13, %s833_s10  ;;  %v460_v13 = vsel %vm231_vm9, %v674_v62, %v675_v61  ;;  %v684_v27 = vunpack.i.l.bf16 %v961_v42  ;;  %v680_v35 = vunpack.i.h.bf16 %v959_v41  ;;  %v679_v36 = vunpack.i.l.bf16 %v959_v41 }
  0xac   :  { %v232_v50 = vsel %vm231_vm9, %v684_v27, %v664_v16 }
  0xad   :  { %737 = vrot.lane.b32.xlu0 %v736_v23, %s830_s7  ;;  %v685_v23 = vunpack.i.h.bf16 %v961_v42 }
  0xae   :  { %722 = vrot.lane.b32.xlu1 %v721_v24, %s829_s6  ;;  %v475_v24 = vsel %vm248_vm12, %v372_v53, %v385_v6 }
  0xb1   :  { %241 = vrot.lane.b32.xlu0 %v238_v28, %s831_s8 }
  0xb2   :  { %727 = vrot.lane.b32.xlu1 %v726_v29, %s832_s9 }
  0xb5   :  { %468 = vrot.lane.b32.xlu0 %v465_v30, %s831_s8 }
  0xb6   :  { %742 = vrot.lane.b32.xlu1 %v741_v31, %s833_s10 }
  0xb9   :  { %239 = vrot.lane.b32.xlu0 %v135_v22, %s831_s8 }
  0xba   :  { %470 = vrot.lane.b32.xlu1 %v370_v33, %s831_s8 }
  0xbd   :  { %259 = vperm.xlu0 %746, %v56_v34  }
  0xbe   :  { %466 = vrot.lane.b32.xlu1 %v369_v26, %s831_s8  ;;  %v1019_v26 = vsel %vm248_vm12, %v76_v44, %v151_v8 }
 0x10b   :  { %v963_v43 = vpop.permute.xlu0 %687 }
 0x10c   :  { %v690_v53 = vunpack.i.h.bf16 %v963_v43  ;;  %v689_v18 = vunpack.i.l.bf16 %v963_v43 }
 0x10f   :  { %v967_v45 = vpop.permute.xlu0 %692 }
 0x110   :  { %v969_v46 = vpop.permute.xlu1 %243  ;;  %v695_v57 = vunpack.i.h.bf16 %v967_v45  ;;  %v694_v19 = vunpack.i.l.bf16 %v967_v45 }
 0x113   :  { %v973_v51 = vpop.permute.xlu0 %702 }
 0x114   :  { %v975_v52 = vpop.permute.xlu1 %697  ;;  %v705_v28 = vunpack.i.h.bf16 %v973_v51  ;;  %v704_v29 = vunpack.i.l.bf16 %v973_v51  ;;  %v459_v51 = vsel %vm231_vm9, %v685_v23, %v674_v62 }
 0x115   :  { %v700_v59 = vunpack.i.h.bf16 %v975_v52  ;;  %v699_v60 = vunpack.i.l.bf16 %v975_v52 }
 0x116   :  { %v412_v56 = vsel %vm179_vm14, %v704_v29, %v705_v28 }
 0x117   :  { %v987_v1 = vpop.permute.xlu0 %717  ;;  %v181_v12 = vsel %vm179_vm14, %v699_v60, %v700_v59 }
 0x118   :  { %v989_v2 = vpop.permute.xlu1 %707  ;;  %v720_v3 = vunpack.i.h.bf16 %v987_v1  ;;  %v719_v4 = vunpack.i.l.bf16 %v987_v1 }
 0x119   :  { %v710_v31 = vunpack.i.h.bf16 %v989_v2  ;;  %v709_v32 = vunpack.i.l.bf16 %v989_v2 }
 0x11a   :  { %v166_v11 = vsel %vm164_vm13, %v719_v4, %v720_v3  ;;  %v165_v5 = vsel %vm164_vm13, %v689_v18, %v719_v4 }
 0x11b   :  { %v733_v15 = vpop.permute.xlu0 %732  ;;  %v252_v22 = vsel %vm248_vm12, %v166_v11, %v181_v12  ;;  %v208_v41 = vsel %vm206_vm15, %v709_v32, %v710_v31 }
 0x11c   :  { %v1009_v17 = vpop.permute.xlu1 %712  ;;  %v605_v30 = vpack.c.bf16 %v252_v22, %v250_v21  ;;  %v735_v33 = vunpack.i.h.bf16 %v733_v15  ;;  %v734_v34 = vunpack.i.l.bf16 %v733_v15  ;;  %v254_v6 = vsel %vm248_vm12, %v193_v10, %v208_v41 }
 0x11d   :  { %v715_v37 = vunpack.i.h.bf16 %v1009_v17  ;;  %v714_v39 = vunpack.i.l.bf16 %v1009_v17 }
 0x11e   :  { %606 = vmatprep.subr.bf16.mxu0 %v605_v30  ;;  %v222_v54 = vsel %vm220_vm0, %v734_v34, %v735_v33  ;;  %v221_v3 = vsel %vm220_vm0, %v694_v19, %v734_v34 }
 0x11f   :  { %v738_v20 = vpop.permute.xlu0 %737  ;;  %v437_v43 = vsel %vm206_vm15, %v714_v39, %v715_v37  ;;  %v256_v7 = vsel %vm248_vm12, %v222_v54, %v233_v9 }
 0x120   :  { %v723_v42 = vpop.permute.xlu1 %722  ;;  %v740_v44 = vunpack.i.h.bf16 %v738_v20  ;;  %v739_v47 = vunpack.i.l.bf16 %v738_v20  ;;  %v479_v9 = vsel %vm248_vm12, %v423_v14, %v437_v43  ;;  %v609_v27 = vpack.c.bf16 %v256_v7, %v254_v6 }
 0x121   :  { %v725_v48 = vunpack.i.h.bf16 %v723_v42  ;;  %v724_v49 = vunpack.i.l.bf16 %v723_v42 }
 0x122   :  { %v450_v16 = vsel %vm220_vm0, %v739_v47, %v740_v44  ;;  %v449_v15 = vsel %vm220_vm0, %v695_v57, %v739_v47 }
 0x123   :  { %v398_v55 = vsel %vm164_vm13, %v724_v49, %v725_v48  ;;  %v242_v59 = vpop.permute.xlu0 %241  ;;  %v397_v45 = vsel %vm164_vm13, %v690_v53, %v724_v49  ;;  %v481_v12 = vsel %vm248_vm12, %v450_v16, %v460_v13  ;;  %v422_v13 = vsel %vm191_vm10, %v680_v35, %v669_v0 }
 0x124   :  { %v728_v61 = vpop.permute.xlu1 %727  ;;  %v477_v62 = vsel %vm248_vm12, %v398_v55, %v412_v56  ;;  %v617_v28 = vpack.c.bf16 %v481_v12, %v479_v9  ;;  %v247_v31 = vsel %vm245_vm1, %v242_v59, %v969_v46 }
 0x125   :  { %v730_v63 = vunpack.i.h.bf16 %v728_v61  ;;  %v729_v1 = vunpack.i.l.bf16 %v728_v61  ;;  %v613_v2 = vpack.c.bf16 %v477_v62, %v475_v24 }
 0x127   :  { %614 = vmatprep.subr.bf16.mxu1 %v613_v2  ;;  %v411_v8 = vsel %vm179_vm14, %v730_v63, %v704_v29  ;;  %v180_v11 = vsel %vm179_vm14, %v729_v1, %v699_v60  ;;  %v469_v21 = vpop.permute.xlu0 %468  ;;  %v192_v60 = vsel %vm191_vm10, %v679_v36, %v659_v58  ;;  %v480_v58 = vsel %vm248_vm12, %v449_v15, %v459_v51  ;;  %v57_v36 = vld [vmem:[%s1097_s1] sm:$0xff]  ;;  %s835_s1 = smov [#allocation5]  }
 0x128   :  { %v743_v17 = vpop.permute.xlu1 %742  ;;  %v476_v4 = vsel %vm248_vm12, %v397_v45, %v411_v8  ;;  %v251_v10 = vsel %vm248_vm12, %v165_v5, %v180_v11  ;;  %s579_s14 = sshll.u32 %s835_s1, 4  ;;  %s580_s14 = int_to_ptr.vmem [resolvable:$true] %s579_s14 }
 0x129   :  { %v745_v22 = vunpack.i.h.bf16 %v743_v17  ;;  %v744_v23 = vunpack.i.l.bf16 %v743_v17  ;;  %v615_v24 = vpack.c.bf16 %v476_v4, %v1016_v25  ;;  %v607_v52 = vpack.c.bf16 %v251_v10, %v1019_v26  ;;  %s791_s15 = scalar_lea.vmem %s580_s14, 512  ;;  %p796_p9 = scmp.lt.s32.totalorder %s580_s14, %s580_s14 }
 0x12a   :  { %v255_v25 = vsel %vm248_vm12, %v221_v3, %v232_v50  ;;  %p792_p8 = scmp.ne.s32.totalorder %s580_s14, %s791_s15  ;;  %p797_p10 = scmp.lt.s32.totalorder %s791_s15, %s791_s15 }
 0x12b   :  { %v436_v29 = vsel %vm206_vm15, %v745_v22, %v714_v39  ;;  %v207_v14 = vsel %vm206_vm15, %v744_v23, %v709_v32  ;;  %616 = vmatpush1.bf16.msra.mxu1 %v615_v24  ;;  %608 = vmatpush1.bf16.msra.mxu0 %v607_v52  ;;  %v240_v32 = vpop.permute.xlu0 %239 }
 0x12c   :  { %v471_v26 = vpop.permute.xlu1 %470  ;;  %610 = vmatprep.subr.bf16.mxu0 %v609_v27  ;;  %618 = vmatprep.subr.bf16.mxu1 %v617_v28  ;;  %v253_v38 = vsel %vm248_vm12, %v192_v60, %v207_v14  ;;  %v478_v40 = vsel %vm248_vm12, %v422_v13, %v436_v29  ;;  %v246_v37 = vsel %vm245_vm1, %v240_v32, %v242_v59  ;;  %p798_p11 = por %p797_p10, %p796_p9 }
 0x12d   :  { %v611_v0 = vpack.c.bf16 %v255_v25, %v253_v38  ;;  %v619_v30 = vpack.c.bf16 %v480_v58, %v478_v40  ;;  %v473_v33 = vsel %vm245_vm1, %v469_v21, %v471_v26 }
 0x12e   :  { %p799_p12 = pnand %p798_p11, %p792_p8 }
 0x12f   :  { %612 = vmatpush1.bf16.msra.mxu0 %v611_v0  ;;  %620 = vmatpush1.bf16.msra.mxu1 %v619_v30 }
 0x130   :  { %v467_v34 = vpop.permute.xlu1 %466  ;;  %595 = vmatprep.subr.msk.mxu0 %vm248_vm12, %v247_v31  ;;  %600 = vmatprep.subr.msk.mxu1 %vm248_vm12, %v473_v33 }
 0x131   :  { %v472_v35 = vsel %vm245_vm1, %v467_v34, %v469_v21 }
 0x133   :  { %596 = vmatpush1.msk.msra.mxu0 %vm248_vm12, %v246_v37  ;;  %601 = vmatpush1.msk.msra.mxu1 %vm248_vm12, %v472_v35 }
 0x134   :  { %597 = vmatmul.mubr.msk.f32.vlgmr.msra.gmra.mrb[0].mxu0 %vm262_vm2, %v57_v36  ;;  %602 = vmatmul.mubr.msk.f32.vlgmr.msra.gmra.mrb[0].mxu1 %vm262_vm2, %v57_v36 }
 0x13c   :  { %v260_v46 = vpop.permute.xlu0 %259 }
 0x207   :  { %v336_v39 = vpop.f32.mrb[0].mxu0  ;;  %v552_v20 = vpop.f32.mrb[0].mxu1 }
 0x208   :  { %v337_v42 = vadd.f32 %v336_v39, %v260_v46  ;;  %v553_v44 = vadd.f32 %v552_v20, %v260_v46  ;;  %v338_v47 = vpop.f32.mrb[1].mxu0  ;;  %v554_v48 = vpop.f32.mrb[1].mxu1 }
 0x209   :  { %v339_v49 = vadd.f32 %v338_v47, %v260_v46  ;;  %v555_v50 = vadd.f32 %v554_v48, %v260_v46 }
 0x20a   :  { %v598_v51 = vmul.f32 -1.442695, %v337_v42  ;;  %v603_v53 = vmul.f32 -1.442695, %v553_v44 }
 0x20b   :  { %v599_v18 = vmul.f32 -1.442695, %v339_v49  ;;  %v604_v41 = vmul.f32 -1.442695, %v555_v50 }
 0x20c   :  { %753 = vpow2.f32 %v598_v51 }
 0x20d   :  { %755 = vpow2.f32 %v603_v53 }
 0x20e   :  { %757 = vpow2.f32 %v599_v18 }
 0x20f   :  { %759 = vpow2.f32 %v604_v41 }
 0x216   :  { %v754_v54 = vpop.eup %753 }
 0x217   :  { %v756_v55 = vpop.eup %755  ;;  %v347_v56 = vadd.f32 1.0, %v754_v54 }
 0x218   :  { %v758_v57 = vpop.eup %757  ;;  %v563_v19 = vadd.f32 1.0, %v756_v55 }
 0x219   :  { %v760_v16 = vpop.eup %759  ;;  %761 = vrcp.f32 %v347_v56  ;;  %v348_v59 = vadd.f32 1.0, %v758_v57 }
 0x21a   :  { %763 = vrcp.f32 %v563_v19  ;;  %v564_v61 = vadd.f32 1.0, %v760_v16 }
 0x21b   :  { %765 = vrcp.f32 %v348_v59 }
 0x21c   :  { %767 = vrcp.f32 %v564_v61 }
 0x223   :  { %v762_v62 = vpop.eup %761 }
 0x224   :  { %v764_v43 = vpop.eup %763  ;;  %v353_v63 = vmul.f32 %v762_v62, %v337_v42 }
 0x225   :  { %v766_v1 = vpop.eup %765  ;;  %v569_v2 = vmul.f32 %v764_v43, %v553_v44 }
 0x226   :  { %v768_v3 = vpop.eup %767  ;;  %355 = vst [vmem:[#allocation5] sm:$0xff] %v353_v63  ;;  %v354_v5 = vmul.f32 %v766_v1, %v339_v49 }
 0x227   :  { %572 = vst [vmem:[#allocation5 + $0x10] sm:$0xff] %v569_v2  ;;  %v570_v6 = vmul.f32 %v768_v3, %v555_v50 }
 0x228   :  { %356 = vst [vmem:[#allocation5 + $0x8] sm:$0xff] %v354_v5 }
 0x229   :  { %573 = vst [vmem:[#allocation5 + $0x18] sm:$0xff] %v570_v6 }
 0x22a   :  { %802 = shalt.err (!%p799_p12)
}
 0x22b   :  { %s803_s18 = scalar_lea.hbm %s1099_s3, 512 }
 0x22c   :  { %p804_p13 = scmp.ne.s32.totalorder %s1099_s3, %s803_s18  ;;  %p807_p0 = scmp.lt.u32.totalorder %s803_s18, %s1099_s3 }
 0x22e   :  { %p809_p1 = pnand %p807_p0, %p804_p13 }
 0x230   :  { %812 = shalt.err (!%p809_p1)
}
 0x231   :  { %s836_s23 = smov 256  }
 0x232   :  { %585 = dma.vmem_to_hbm [thread:$0]  %s580_s14, 512, %s1099_s3, [#allocation4], %s836_s23, %s836_s23, %s823_s27  }
 0x233   :  { %815 = dma.done.wait [#allocation4], 512  }
 0x234   :  { %816 = vsyncadd [#allocation4], 4294966784 }
 0x235   :  { %589 = vsyncpa [#allocation3], 1 }
 0x236   :  { %590 = vsyncpa [#allocation4], 1 }

</bundles_post_ra>
